<compile_context>
chip_gen: v7x
topology: tpu7x:2x2x1
jax: 0.10.0
libtpu: 0.0.40
codegen_flags: <defaults>
</compile_context>

<pallas_src>
import functools

import jax
import jax.numpy as jnp
from jax.experimental import pallas as pl
from jax.experimental.pallas import tpu as pltpu


_LANE = 128            # pad final output dim to a full lane tile -> unmasked vst
_SUBLANE = 8
_TM_CAP = 1024         # max batch rows per grid step
_X_BLOCK_BYTES = 4 << 20   # cap f32 x block at 4 MiB (2x buffered = 8 MiB < v5e 16 MiB)


def _round_up(x, m):
    return ((x + m - 1) // m) * m


def _mlp_kernel(n_layers, x_ref, *refs):
    """refs = (w0, b0, w1, b1, ..., w_{L-1}, b_{L-1}, o_ref)."""
    o_ref = refs[-1]
    params = refs[:-1]

    # x arrives as f32 straight from HBM; the bf16 cast happens here in VMEM
    # (free on the VPU) instead of as a separate XLA pass over HBM.
    h = x_ref[...].astype(jnp.bfloat16)
    for i in range(n_layers):
        w = params[2 * i][...]                       # bf16 (in, out), VMEM-resident
        b = params[2 * i + 1][...]                   # f32  (1, out), broadcasts over rows
        acc = jnp.dot(h, w, preferred_element_type=jnp.float32) + b
        acc = jnp.maximum(acc, 0.0)                  # ReLU after every Linear (per module)
        h = acc.astype(jnp.bfloat16)                 # bf16 for next MXU op / final store
    o_ref[...] = h.astype(o_ref.dtype)               # lane-dense bf16 store (padded to 128)


def mlp_forward(x, weights, biases):
    """Whole MLP forward in one Pallas kernel.

    x: (N, C, H, W) float32;  weights[i]: (in_i, out_i) f32;  biases[i]: (out_i,) f32
    Returns torch.squeeze()-equivalent of the (N, n_classes) logits (float32).
    """
    B = x.shape[0]
    x_flat = x.reshape(B, -1)                        # nn.Flatten(1); stays f32
    d_in = x_flat.shape[1]
    n_layers = len(weights)
    n_classes = weights[-1].shape[1]

    # Pad the last layer's output dim to a full lane (128): extra zero weight
    # columns + zero bias give ReLU(0)=0 columns that are sliced off below.
    n_pad = _round_up(n_classes, _LANE)

    args = [x_flat]
    for li, (w, b) in enumerate(zip(weights, biases)):
        w = w.astype(jnp.bfloat16)
        b = b.reshape(1, -1).astype(jnp.float32)
        if li == n_layers - 1 and w.shape[1] != n_pad:
            w = jnp.pad(w, ((0, 0), (0, n_pad - w.shape[1])))
            b = jnp.pad(b, ((0, 0), (0, n_pad - b.shape[1])))
        args.append(w)
        args.append(b)

    # Batch tiling: one grid point for toy batches; otherwise aim for >= 4 grid
    # steps (v7x: 2 TCs x >= 2 pipelined steps) with the tile capped so the f32
    # x block stays <= 4 MiB and <= 1024 rows.
    tm_cap = max(_SUBLANE,
                 min(_TM_CAP, (_X_BLOCK_BYTES // (d_in * 4)) // _SUBLANE * _SUBLANE))
    if B <= _SUBLANE:
        tm, b_pad = B, B
    else:
        tm = max(_SUBLANE, min(tm_cap, _round_up(pl.cdiv(B, 4), _SUBLANE)))
        b_pad = _round_up(B, tm)
        if b_pad != B:
            args[0] = jnp.pad(args[0], ((0, b_pad - B), (0, 0)))
    grid = (b_pad // tm,)

    in_specs = [pl.BlockSpec((tm, d_in), lambda i: (i, 0))]
    for a in args[1:]:
        # Constant index map -> weights/biases are fetched once and stay
        # VMEM-resident across all batch steps.
        in_specs.append(pl.BlockSpec(a.shape, lambda i: (0, 0)))
    out_specs = pl.BlockSpec((tm, n_pad), lambda i: (i, 0))

    # Honest cost hint so XLA can schedule around this small custom call.
    flops = 2 * b_pad * sum(int(w.shape[0]) * int(w.shape[1]) for w in weights)
    bytes_accessed = (sum(int(a.size) * a.dtype.itemsize for a in args)
                      + b_pad * n_pad * 2)            # bf16 output writeback
    cost = pl.CostEstimate(flops=flops, transcendentals=0,
                           bytes_accessed=bytes_accessed)

    out = pl.pallas_call(
        functools.partial(_mlp_kernel, n_layers),
        out_shape=jax.ShapeDtypeStruct((b_pad, n_pad), jnp.bfloat16),
        grid=grid,
        in_specs=in_specs,
        out_specs=out_specs,
        compiler_params=pltpu.CompilerParams(
            dimension_semantics=("parallel",)),       # megacore/v7x: split batch over TCs
        cost_estimate=cost,
    )(*args)

    logits = out[:B, :n_classes].astype(jnp.float32)
    return jnp.squeeze(logits)                        # torch.squeeze(...) in MLP.forward


def init_params(key, input_size, hidden_size, n_classes, num_layers):
    """Deterministic init mimicking nn.Linear's U(-1/sqrt(in), 1/sqrt(in))."""
    dims = []
    in_f, out_f = input_size, hidden_size
    for i in range(num_layers + 2):
        if i == num_layers + 1:
            out_f = n_classes
        dims.append((in_f, out_f))
        in_f = out_f

    weights, biases = [], []
    for (di, do) in dims:
        key, kw, kb = jax.random.split(key, 3)
        bound = 1.0 / (di ** 0.5)
        weights.append(jax.random.uniform(kw, (di, do), jnp.float32, -bound, bound))
        biases.append(jax.random.uniform(kb, (do,), jnp.float32, -bound, bound))
    return weights, biases


if __name__ == "__main__":
    key = jax.random.PRNGKey(0)

    # Small shapes consistent with the module: batch=2, channels=4, spatial=16.
    N, C, H, W = 2, 4, 16, 16
    input_size = C * H * W        # 1024 — flattened feature count
    hidden_size = 64
    n_classes = 2
    num_layers = 3                # -> 5 Linear layers total

    key, kx, kp = jax.random.split(key, 3)
    x = jax.random.normal(kx, (N, C, H, W), jnp.float32)
    weights, biases = init_params(kp, input_size, hidden_size, n_classes, num_layers)

    out = mlp_forward(x, weights, biases)
    jax.block_until_ready(out)

    # Reference 1: same bf16-operand / f32-accumulate / bf16-store numerics as
    # the kernel.
    h = x.reshape(N, -1).astype(jnp.bfloat16)
    for w_, b_ in zip(weights, biases):
        acc = jnp.dot(h, w_.astype(jnp.bfloat16),
                      preferred_element_type=jnp.float32) + b_
        acc = jnp.maximum(acc, 0.0)
        h = acc.astype(jnp.bfloat16)
    ref_bf16 = jnp.squeeze(h.astype(jnp.float32))

    # Reference 2: the original module's pure-f32 math (loose tol for bf16 rounding).
    hf = x.reshape(N, -1)
    for w_, b_ in zip(weights, biases):
        hf = jnp.maximum(hf @ w_ + b_, 0.0)
    ref_f32 = jnp.squeeze(hf)

    assert out.shape == ref_f32.shape
    assert jnp.allclose(out, ref_bf16, atol=1e-2, rtol=1e-2)
    assert jnp.allclose(out, ref_f32, atol=5e-2, rtol=5e-2)

    print("KERNEL_OK")
</pallas_src>

<mosaic_0001>
module attributes {stable_mosaic.version = 11 : i64} {
  func.func @_mlp_kernel(%arg0: i32, %arg1: memref<2x1024xf32, #tpu.memory_space<vmem>>, %arg2: memref<1024x64xbf16, #tpu.memory_space<vmem>>, %arg3: memref<1x64xf32, #tpu.memory_space<vmem>>, %arg4: memref<64x64xbf16, #tpu.memory_space<vmem>>, %arg5: memref<1x64xf32, #tpu.memory_space<vmem>>, %arg6: memref<64x64xbf16, #tpu.memory_space<vmem>>, %arg7: memref<1x64xf32, #tpu.memory_space<vmem>>, %arg8: memref<64x64xbf16, #tpu.memory_space<vmem>>, %arg9: memref<1x64xf32, #tpu.memory_space<vmem>>, %arg10: memref<64x128xbf16, #tpu.memory_space<vmem>>, %arg11: memref<1x128xf32, #tpu.memory_space<vmem>>, %arg12: memref<2x128xbf16, #tpu.memory_space<vmem>>) attributes {dimension_semantics = [#tpu.dimension_semantics<parallel>], iteration_bounds = array<i64: 1>, scalar_prefetch = 0 : i64, scratch_operands = 0 : i64, tpu.core_type = #tpu.core_type<tc>, window_params = [{transform_indices = @transform_0, window_bounds = array<i64: 2, 1024>}, {pipeline_mode = #tpu.pipeline_mode<synchronous>, transform_indices = @transform_1, window_bounds = array<i64: 1024, 64>}, {pipeline_mode = #tpu.pipeline_mode<synchronous>, transform_indices = @transform_2, window_bounds = array<i64: 1, 64>}, {pipeline_mode = #tpu.pipeline_mode<synchronous>, transform_indices = @transform_3, window_bounds = array<i64: 64, 64>}, {pipeline_mode = #tpu.pipeline_mode<synchronous>, transform_indices = @transform_4, window_bounds = array<i64: 1, 64>}, {pipeline_mode = #tpu.pipeline_mode<synchronous>, transform_indices = @transform_5, window_bounds = array<i64: 64, 64>}, {pipeline_mode = #tpu.pipeline_mode<synchronous>, transform_indices = @transform_6, window_bounds = array<i64: 1, 64>}, {pipeline_mode = #tpu.pipeline_mode<synchronous>, transform_indices = @transform_7, window_bounds = array<i64: 64, 64>}, {pipeline_mode = #tpu.pipeline_mode<synchronous>, transform_indices = @transform_8, window_bounds = array<i64: 1, 64>}, {pipeline_mode = #tpu.pipeline_mode<synchronous>, transform_indices = @transform_9, window_bounds = array<i64: 64, 128>}, {pipeline_mode = #tpu.pipeline_mode<synchronous>, transform_indices = @transform_10, window_bounds = array<i64: 1, 128>}, {transform_indices = @transform_11, window_bounds = array<i64: 2, 128>}]} {
    %c0 = arith.constant 0 : index
    %c0_0 = arith.constant 0 : index
    %0 = vector.load %arg1[%c0, %c0_0] : memref<2x1024xf32, #tpu.memory_space<vmem>>, vector<2x1024xf32>
    %1 = arith.truncf %0 : vector<2x1024xf32> to vector<2x1024xbf16>
    %c0_1 = arith.constant 0 : index
    %c0_2 = arith.constant 0 : index
    %2 = vector.load %arg2[%c0_1, %c0_2] : memref<1024x64xbf16, #tpu.memory_space<vmem>>, vector<1024x64xbf16>
    %c0_3 = arith.constant 0 : index
    %c0_4 = arith.constant 0 : index
    %3 = vector.load %arg3[%c0_3, %c0_4] : memref<1x64xf32, #tpu.memory_space<vmem>>, vector<1x64xf32>
    %cst = arith.constant dense<0.000000e+00> : vector<2x64xf32>
    %4 = tpu.matmul %1, %2, %cst {dimension_numbers = #tpu.dot_dimension_numbers<[1], [0], [0], [1], [0, 0, 1, 1], [], []>} : vector<2x1024xbf16>, vector<1024x64xbf16>, vector<2x64xf32> -> vector<2x64xf32>
    %5 = vector.broadcast %3 : vector<1x64xf32> to vector<2x64xf32>
    %6 = arith.addf %4, %5 : vector<2x64xf32>
    %cst_5 = arith.constant 0.000000e+00 : f32
    %7 = vector.broadcast %cst_5 : f32 to vector<2x64xf32>
    %8 = arith.maximumf %6, %7 : vector<2x64xf32>
    %9 = arith.truncf %8 : vector<2x64xf32> to vector<2x64xbf16>
    %c0_6 = arith.constant 0 : index
    %c0_7 = arith.constant 0 : index
    %10 = vector.load %arg4[%c0_6, %c0_7] : memref<64x64xbf16, #tpu.memory_space<vmem>>, vector<64x64xbf16>
    %c0_8 = arith.constant 0 : index
    %c0_9 = arith.constant 0 : index
    %11 = vector.load %arg5[%c0_8, %c0_9] : memref<1x64xf32, #tpu.memory_space<vmem>>, vector<1x64xf32>
    %cst_10 = arith.constant dense<0.000000e+00> : vector<2x64xf32>
    %12 = tpu.matmul %9, %10, %cst_10 {dimension_numbers = #tpu.dot_dimension_numbers<[1], [0], [0], [1], [0, 0, 1, 1], [], []>} : vector<2x64xbf16>, vector<64x64xbf16>, vector<2x64xf32> -> vector<2x64xf32>
    %13 = vector.broadcast %11 : vector<1x64xf32> to vector<2x64xf32>
    %14 = arith.addf %12, %13 : vector<2x64xf32>
    %cst_11 = arith.constant 0.000000e+00 : f32
    %15 = vector.broadcast %cst_11 : f32 to vector<2x64xf32>
    %16 = arith.maximumf %14, %15 : vector<2x64xf32>
    %17 = arith.truncf %16 : vector<2x64xf32> to vector<2x64xbf16>
    %c0_12 = arith.constant 0 : index
    %c0_13 = arith.constant 0 : index
    %18 = vector.load %arg6[%c0_12, %c0_13] : memref<64x64xbf16, #tpu.memory_space<vmem>>, vector<64x64xbf16>
    %c0_14 = arith.constant 0 : index
    %c0_15 = arith.constant 0 : index
    %19 = vector.load %arg7[%c0_14, %c0_15] : memref<1x64xf32, #tpu.memory_space<vmem>>, vector<1x64xf32>
    %cst_16 = arith.constant dense<0.000000e+00> : vector<2x64xf32>
    %20 = tpu.matmul %17, %18, %cst_16 {dimension_numbers = #tpu.dot_dimension_numbers<[1], [0], [0], [1], [0, 0, 1, 1], [], []>} : vector<2x64xbf16>, vector<64x64xbf16>, vector<2x64xf32> -> vector<2x64xf32>
    %21 = vector.broadcast %19 : vector<1x64xf32> to vector<2x64xf32>
    %22 = arith.addf %20, %21 : vector<2x64xf32>
    %cst_17 = arith.constant 0.000000e+00 : f32
    %23 = vector.broadcast %cst_17 : f32 to vector<2x64xf32>
    %24 = arith.maximumf %22, %23 : vector<2x64xf32>
    %25 = arith.truncf %24 : vector<2x64xf32> to vector<2x64xbf16>
    %c0_18 = arith.constant 0 : index
    %c0_19 = arith.constant 0 : index
    %26 = vector.load %arg8[%c0_18, %c0_19] : memref<64x64xbf16, #tpu.memory_space<vmem>>, vector<64x64xbf16>
    %c0_20 = arith.constant 0 : index
    %c0_21 = arith.constant 0 : index
    %27 = vector.load %arg9[%c0_20, %c0_21] : memref<1x64xf32, #tpu.memory_space<vmem>>, vector<1x64xf32>
    %cst_22 = arith.constant dense<0.000000e+00> : vector<2x64xf32>
    %28 = tpu.matmul %25, %26, %cst_22 {dimension_numbers = #tpu.dot_dimension_numbers<[1], [0], [0], [1], [0, 0, 1, 1], [], []>} : vector<2x64xbf16>, vector<64x64xbf16>, vector<2x64xf32> -> vector<2x64xf32>
    %29 = vector.broadcast %27 : vector<1x64xf32> to vector<2x64xf32>
    %30 = arith.addf %28, %29 : vector<2x64xf32>
    %cst_23 = arith.constant 0.000000e+00 : f32
    %31 = vector.broadcast %cst_23 : f32 to vector<2x64xf32>
    %32 = arith.maximumf %30, %31 : vector<2x64xf32>
    %33 = arith.truncf %32 : vector<2x64xf32> to vector<2x64xbf16>
    %c0_24 = arith.constant 0 : index
    %c0_25 = arith.constant 0 : index
    %34 = vector.load %arg10[%c0_24, %c0_25] : memref<64x128xbf16, #tpu.memory_space<vmem>>, vector<64x128xbf16>
    %c0_26 = arith.constant 0 : index
    %c0_27 = arith.constant 0 : index
    %35 = vector.load %arg11[%c0_26, %c0_27] : memref<1x128xf32, #tpu.memory_space<vmem>>, vector<1x128xf32>
    %cst_28 = arith.constant dense<0.000000e+00> : vector<2x128xf32>
    %36 = tpu.matmul %33, %34, %cst_28 {dimension_numbers = #tpu.dot_dimension_numbers<[1], [0], [0], [1], [0, 0, 1, 1], [], []>} : vector<2x64xbf16>, vector<64x128xbf16>, vector<2x128xf32> -> vector<2x128xf32>
    %37 = vector.broadcast %35 : vector<1x128xf32> to vector<2x128xf32>
    %38 = arith.addf %36, %37 : vector<2x128xf32>
    %cst_29 = arith.constant 0.000000e+00 : f32
    %39 = vector.broadcast %cst_29 : f32 to vector<2x128xf32>
    %40 = arith.maximumf %38, %39 : vector<2x128xf32>
    %41 = arith.truncf %40 : vector<2x128xf32> to vector<2x128xbf16>
    %c0_30 = arith.constant 0 : index
    %c0_31 = arith.constant 0 : index
    %42 = vector.load %arg12[%c0_30, %c0_31] : memref<2x128xbf16, #tpu.memory_space<vmem>>, vector<2x128xbf16>
    tpu.vector_store %arg12[%c0_30, %c0_31], %41 {strides = array<i32>} : memref<2x128xbf16, #tpu.memory_space<vmem>>, vector<2x128xbf16>,
    return
  }
  func.func @transform_0(%arg0: i32) -> (i32, i32) {
    %c0_i32 = arith.constant 0 : i32
    %c0_i32_0 = arith.constant 0 : i32
    return %arg0, %c0_i32 : i32, i32
  }
  func.func @transform_1(%arg0: i32) -> (i32, i32) {
    %c0_i32 = arith.constant 0 : i32
    %c0_i32_0 = arith.constant 0 : i32
    %c0_i32_1 = arith.constant 0 : i32
    return %c0_i32, %c0_i32_0 : i32, i32
  }
  func.func @transform_2(%arg0: i32) -> (i32, i32) {
    %c0_i32 = arith.constant 0 : i32
    %c0_i32_0 = arith.constant 0 : i32
    %c0_i32_1 = arith.constant 0 : i32
    return %c0_i32, %c0_i32_0 : i32, i32
  }
  func.func @transform_3(%arg0: i32) -> (i32, i32) {
    %c0_i32 = arith.constant 0 : i32
    %c0_i32_0 = arith.constant 0 : i32
    %c0_i32_1 = arith.constant 0 : i32
    return %c0_i32, %c0_i32_0 : i32, i32
  }
  func.func @transform_4(%arg0: i32) -> (i32, i32) {
    %c0_i32 = arith.constant 0 : i32
    %c0_i32_0 = arith.constant 0 : i32
    %c0_i32_1 = arith.constant 0 : i32
    return %c0_i32, %c0_i32_0 : i32, i32
  }
  func.func @transform_5(%arg0: i32) -> (i32, i32) {
    %c0_i32 = arith.constant 0 : i32
    %c0_i32_0 = arith.constant 0 : i32
    %c0_i32_1 = arith.constant 0 : i32
    return %c0_i32, %c0_i32_0 : i32, i32
  }
  func.func @transform_6(%arg0: i32) -> (i32, i32) {
    %c0_i32 = arith.constant 0 : i32
    %c0_i32_0 = arith.constant 0 : i32
    %c0_i32_1 = arith.constant 0 : i32
    return %c0_i32, %c0_i32_0 : i32, i32
  }
  func.func @transform_7(%arg0: i32) -> (i32, i32) {
    %c0_i32 = arith.constant 0 : i32
    %c0_i32_0 = arith.constant 0 : i32
    %c0_i32_1 = arith.constant 0 : i32
    return %c0_i32, %c0_i32_0 : i32, i32
  }
  func.func @transform_8(%arg0: i32) -> (i32, i32) {
    %c0_i32 = arith.constant 0 : i32
    %c0_i32_0 = arith.constant 0 : i32
    %c0_i32_1 = arith.constant 0 : i32
    return %c0_i32, %c0_i32_0 : i32, i32
  }
  func.func @transform_9(%arg0: i32) -> (i32, i32) {
    %c0_i32 = arith.constant 0 : i32
    %c0_i32_0 = arith.constant 0 : i32
    %c0_i32_1 = arith.constant 0 : i32
    return %c0_i32, %c0_i32_0 : i32, i32
  }
  func.func @transform_10(%arg0: i32) -> (i32, i32) {
    %c0_i32 = arith.constant 0 : i32
    %c0_i32_0 = arith.constant 0 : i32
    %c0_i32_1 = arith.constant 0 : i32
    return %c0_i32, %c0_i32_0 : i32, i32
  }
  func.func @transform_11(%arg0: i32) -> (i32, i32) {
    %c0_i32 = arith.constant 0 : i32
    %c0_i32_0 = arith.constant 0 : i32
    return %arg0, %c0_i32 : i32, i32
  }
}

</mosaic_0001>

<bundles_post_ra>
// kernel: tpu_custom_call.1
= control target key start
LH: loop header
LB: loop body
LE: loop exit
PB: predicated region body
PF: predicated region fallthrough
CT: control target
= control target key end

     0   :  { %v48_v28 = vlaneseq  ;;  %v1482_v36 = vmov 1983009808   ;;  %s1853_s0 = inlined_call_operand.vmem [shape: f32[2,1024], index: 0, kind: input, shape index: {}]   ;;  %s1854_s1 = inlined_call_operand.vmem [shape: bf16[1024,64], index: 1, kind: input, shape index: {}]   ;;  %s1855_s2 = inlined_call_operand.vmem [shape: f32[1,64], index: 2, kind: input, shape index: {}]   ;;  %s1856_s3 = inlined_call_operand.vmem [shape: bf16[64,64], index: 3, kind: input, shape index: {}]   ;;  %s1857_s4 = inlined_call_operand.vmem [shape: f32[1,64], index: 4, kind: input, shape index: {}]   ;;  %s1858_s5 = inlined_call_operand.vmem [shape: bf16[64,64], index: 5, kind: input, shape index: {}]   ;;  %s1859_s6 = inlined_call_operand.vmem [shape: f32[1,64], index: 6, kind: input, shape index: {}]   ;;  %s1860_s7 = inlined_call_operand.vmem [shape: bf16[64,64], index: 7, kind: input, shape index: {}]   ;;  %s1861_s8 = inlined_call_operand.vmem [shape: f32[1,64], index: 8, kind: input, shape index: {}]   ;;  %s1862_s9 = inlined_call_operand.vmem [shape: bf16[64,128], index: 9, kind: input, shape index: {}]   ;;  %s1863_s10 = inlined_call_operand.vmem [shape: f32[1,128], index: 10, kind: input, shape index: {}]   ;;  %s1864_s11 = inlined_call_operand.hbm [shape: bf16[2,128], index: 11, kind: output, shape index: {}]  }
   0x1   :  { %v1376_v0 = vld [vmem:[%s1854_s1 + $0x40] sm:$0xff]   ;;  %v1380_v4 = vld [vmem:[%s1854_s1 + $0x48] sm:$0xff]   ;;  %v1384_v8 = vld [vmem:[%s1854_s1 + $0x50] sm:$0xff]   ;;  %v46_v37 = vunpack.c.l.s4 %v1482_v36 }
   0x2   :  { %v1377_v1 = vld [vmem:[%s1854_s1 + $0xc0] sm:$0xff]   ;;  %1216 = vmatprep.subr.bf16.mxu0 %v1376_v0  ;;  %v1381_v5 = vld [vmem:[%s1854_s1 + $0xc8] sm:$0xff]   ;;  %v1385_v9 = vld [vmem:[%s1854_s1 + $0xd0] sm:$0xff]   ;;  %v49_v33 = vshrl.u32 %v48_v28, 7 }
   0x3   :  { %v1378_v2 = vld [vmem:[%s1854_s1] sm:$0xff]   ;;  %1238 = vmatprep.subr.bf16.mxu1 %v1377_v1  ;;  %v1382_v6 = vld [vmem:[%s1854_s1 + $0x8] sm:$0xff]   ;;  %v1386_v10 = vld [vmem:[%s1854_s1 + $0x10] sm:$0xff]   ;;  %v47_v39 = vunpack.c.0.s8 %v46_v37 }
   0x4   :  { %v1379_v3 = vld [vmem:[%s1854_s1 + $0x80] sm:$0xff]   ;;  %1217 = vmatpush3.bf16.msra.mxu0 %v1378_v2  ;;  %v1383_v7 = vld [vmem:[%s1854_s1 + $0x88] sm:$0xff]   ;;  %v1387_v11 = vld [vmem:[%s1854_s1 + $0x90] sm:$0xff]  }
   0x5   :  { %1239 = vmatpush3.bf16.msra.mxu1 %v1379_v3  ;;  %1218 = vmatprep.subr.bf16.mxu0 %v1380_v4  ;;  %v1388_v12 = vld [vmem:[%s1854_s1 + $0x58] sm:$0xff]   ;;  %v1392_v16 = vld [vmem:[%s1854_s1 + $0x60] sm:$0xff]   ;;  %v1396_v20 = vld [vmem:[%s1854_s1 + $0x68] sm:$0xff]   ;;  %v1651_v41 = vsub.s32 %v47_v39, %v49_v33 }
   0x6   :  { %1240 = vmatprep.subr.bf16.mxu1 %v1381_v5  ;;  %v1389_v13 = vld [vmem:[%s1854_s1 + $0xd8] sm:$0xff]   ;;  %v1393_v17 = vld [vmem:[%s1854_s1 + $0xe0] sm:$0xff]   ;;  %v1397_v21 = vld [vmem:[%s1854_s1 + $0xe8] sm:$0xff]  }
   0x7   :  { %v1390_v14 = vld [vmem:[%s1854_s1 + $0x18] sm:$0xff]   ;;  %v1394_v18 = vld [vmem:[%s1854_s1 + $0x20] sm:$0xff]   ;;  %v1398_v22 = vld [vmem:[%s1854_s1 + $0x28] sm:$0xff]  }
   0x8   :  { %1219 = vmatpush3.bf16.msra.mxu0 %v1382_v6  ;;  %v1391_v15 = vld [vmem:[%s1854_s1 + $0x98] sm:$0xff]   ;;  %v1395_v19 = vld [vmem:[%s1854_s1 + $0xa0] sm:$0xff]   ;;  %v1399_v23 = vld [vmem:[%s1854_s1 + $0xa8] sm:$0xff]  }
   0x9   :  { %1241 = vmatpush3.bf16.msra.mxu1 %v1383_v7  ;;  %1220 = vmatprep.subr.bf16.mxu0 %v1384_v8  ;;  %v1400_v24 = vld [vmem:[%s1854_s1 + $0x70] sm:$0xff]   ;;  %v1404_v29 = vld [vmem:[%s1854_s1 + $0x78] sm:$0xff]   ;;  %v40_v34 = vld [vmem:[%s1853_s0] sm:$0xff] }
   0xa   :  { %1242 = vmatprep.subr.bf16.mxu1 %v1385_v9  ;;  %v1401_v25 = vld [vmem:[%s1854_s1 + $0xf0] sm:$0xff]   ;;  %v1405_v30 = vld [vmem:[%s1854_s1 + $0xf8] sm:$0xff]   ;;  %v1409_v35 = vld [vmem:[%s1854_s1 + $0x140] sm:$0xff]   ;;  %v44_v40 = vcombine.high %v40_v34, %v40_v34  ;;  %v51_v42 = vrot.slane %v40_v34, %v1651_v41 }
   0xb   :  { %v1402_v26 = vld [vmem:[%s1854_s1 + $0x30] sm:$0xff]   ;;  %v1406_v31 = vld [vmem:[%s1854_s1 + $0x38] sm:$0xff]   ;;  %v1410_v38 = vld [vmem:[%s1854_s1 + $0x1c0] sm:$0xff]  }
   0xc   :  { %1221 = vmatpush3.bf16.msra.mxu0 %v1386_v10  ;;  %v1403_v27 = vld [vmem:[%s1854_s1 + $0xb0] sm:$0xff]   ;;  %v1407_v32 = vld [vmem:[%s1854_s1 + $0xb8] sm:$0xff]   ;;  %v58_v43 = vrot.slane %v44_v40, %v1651_v41  ;;  %v59_v44 = vcombine.high %v51_v42, %v51_v42  ;;  %v1411_v46 = vld [vmem:[%s1854_s1 + $0x100] sm:$0xff]   ;;  %v86_v47 = vpack.c.bf16 %v51_v42, %v51_v42 }
   0xd   :  { %1243 = vmatpush3.bf16.msra.mxu1 %v1387_v11  ;;  %1222 = vmatprep.subr.bf16.mxu0 %v1388_v12  ;;  %v1412_v49 = vld [vmem:[%s1854_s1 + $0x180] sm:$0xff]   ;;  %v1413_v52 = vld [vmem:[%s1854_s1 + $0x148] sm:$0xff]   ;;  %v1417_v56 = vld [vmem:[%s1854_s1 + $0x150] sm:$0xff]  }
   0xe   :  { %1244 = vmatprep.subr.bf16.mxu1 %v1389_v13  ;;  %v60_v45 = vcombine.high %v58_v43, %v58_v43  ;;  %v88_v48 = vpack.c.bf16 %v58_v43, %v58_v43  ;;  %v87_v50 = vpack.c.bf16 %v59_v44, %v59_v44  ;;  %v1414_v53 = vld [vmem:[%s1854_s1 + $0x1c8] sm:$0xff]   ;;  %v1418_v57 = vld [vmem:[%s1854_s1 + $0x1d0] sm:$0xff]   ;;  %v1421_v60 = vld [vmem:[%s1854_s1 + $0x158] sm:$0xff]  }
   0xf   :  { %v1415_v54 = vld [vmem:[%s1854_s1 + $0x108] sm:$0xff]   ;;  %v1419_v58 = vld [vmem:[%s1854_s1 + $0x110] sm:$0xff]   ;;  %v1422_v61 = vld [vmem:[%s1854_s1 + $0x1d8] sm:$0xff]  }
  0x10   :  { %1223 = vmatpush3.bf16.msra.mxu0 %v1390_v14  ;;  %v89_v51 = vpack.c.bf16 %v60_v45, %v60_v45  ;;  %645 = vmatprep.mubr.bf16.mxu0 %v87_v50  ;;  %v1416_v55 = vld [vmem:[%s1854_s1 + $0x188] sm:$0xff]   ;;  %v1420_v59 = vld [vmem:[%s1854_s1 + $0x190] sm:$0xff]   ;;  %v1423_v62 = vld [vmem:[%s1854_s1 + $0x118] sm:$0xff]  }
  0x11   :  { %1245 = vmatpush3.bf16.msra.mxu1 %v1391_v15  ;;  %1224 = vmatprep.subr.bf16.mxu0 %v1392_v16  ;;  %v1424_v63 = vld [vmem:[%s1854_s1 + $0x198] sm:$0xff]   ;;  %v1425_v0 = vld [vmem:[%s1854_s1 + $0x160] sm:$0xff]   ;;  %v1429_v4 = vld [vmem:[%s1854_s1 + $0x168] sm:$0xff]  }
  0x12   :  { %1246 = vmatprep.subr.bf16.mxu1 %v1393_v17  ;;  %685 = vmatprep.mubr.bf16.mxu1 %v89_v51  ;;  %v1426_v1 = vld [vmem:[%s1854_s1 + $0x1e0] sm:$0xff]   ;;  %v1430_v5 = vld [vmem:[%s1854_s1 + $0x1e8] sm:$0xff]   ;;  %v1433_v8 = vld [vmem:[%s1854_s1 + $0x170] sm:$0xff]  }
  0x13   :  { %v1427_v2 = vld [vmem:[%s1854_s1 + $0x120] sm:$0xff]   ;;  %v1431_v6 = vld [vmem:[%s1854_s1 + $0x128] sm:$0xff]   ;;  %v1434_v9 = vld [vmem:[%s1854_s1 + $0x1f0] sm:$0xff]  }
  0x14   :  { %1225 = vmatpush3.bf16.msra.mxu0 %v1394_v18  ;;  %v1428_v3 = vld [vmem:[%s1854_s1 + $0x1a0] sm:$0xff]   ;;  %v1432_v7 = vld [vmem:[%s1854_s1 + $0x1a8] sm:$0xff]   ;;  %v1435_v11 = vld [vmem:[%s1854_s1 + $0x130] sm:$0xff]  }
  0x15   :  { %1247 = vmatpush3.bf16.msra.mxu1 %v1395_v19  ;;  %1226 = vmatprep.subr.bf16.mxu0 %v1396_v20  ;;  %v41_v10 = vld [vmem:[%s1853_s0 + $0x8] sm:$0xff]  ;;  %v1436_v12 = vld [vmem:[%s1854_s1 + $0x1b0] sm:$0xff]   ;;  %v1437_v15 = vld [vmem:[%s1854_s1 + $0x178] sm:$0xff]  }
  0x16   :  { %1248 = vmatprep.subr.bf16.mxu1 %v1397_v21  ;;  %v68_v13 = vrot.slane %v41_v10, %v1651_v41  ;;  %v61_v14 = vcombine.high %v41_v10, %v41_v10  ;;  %v1438_v16 = vld [vmem:[%s1854_s1 + $0x1f8] sm:$0xff]  }
  0x17   :  { %v1439_v19 = vld [vmem:[%s1854_s1 + $0x138] sm:$0xff]  }
  0x18   :  { %1227 = vmatpush3.bf16.msra.mxu0 %v1398_v22  ;;  %v76_v17 = vcombine.high %v68_v13, %v68_v13  ;;  %v75_v18 = vrot.slane %v61_v14, %v1651_v41  ;;  %v1440_v20 = vld [vmem:[%s1854_s1 + $0x1b8] sm:$0xff]  }
  0x19   :  { %1249 = vmatpush3.bf16.msra.mxu1 %v1399_v23  ;;  %1228 = vmatprep.subr.bf16.mxu0 %v1400_v24  ;;  %v90_v24 = vpack.c.bf16 %v68_v13, %v68_v13 }
  0x1a   :  { %1250 = vmatprep.subr.bf16.mxu1 %v1401_v25  ;;  %v91_v21 = vpack.c.bf16 %v76_v17, %v76_v17  ;;  %v77_v22 = vcombine.high %v75_v18, %v75_v18  ;;  %v92_v25 = vpack.c.bf16 %v75_v18, %v75_v18 }
  0x1c   :  { %1229 = vmatpush3.bf16.msra.mxu0 %v1402_v26  ;;  %v93_v23 = vpack.c.bf16 %v77_v22, %v77_v22 }
  0x1d   :  { %1251 = vmatpush3.bf16.msra.mxu1 %v1403_v27  ;;  %1230 = vmatprep.subr.bf16.mxu0 %v1404_v29 }
  0x1e   :  { %1252 = vmatprep.subr.bf16.mxu1 %v1405_v30 }
  0x20   :  { %1231 = vmatpush3.bf16.msra.mxu0 %v1406_v31 }
  0x21   :  { %1253 = vmatpush3.bf16.msra.mxu1 %v1407_v32  ;;  %1260 = vmatprep.subr.bf16.mxu0 %v1409_v35 }
  0x22   :  { %1282 = vmatprep.subr.bf16.mxu1 %v1410_v38 }
  0x23   :  { %646 = vmatmul.mubr.bf16.vlgmr.msra.gmra.mrb[0].mxu0 %v86_v47 }
  0x24   :  { %686 = vmatmul.mubr.bf16.vlgmr.msra.gmra.mrb[0].mxu1 %v88_v48  ;;  %1261 = vmatpush3.bf16.msra.mxu0 %v1411_v46 }
  0x25   :  { %1283 = vmatpush3.bf16.msra.mxu1 %v1412_v49  ;;  %1262 = vmatprep.subr.bf16.mxu0 %v1413_v52 }
  0x26   :  { %1284 = vmatprep.subr.bf16.mxu1 %v1414_v53  ;;  %725 = vmatprep.mubr.bf16.mxu0 %v91_v21 }
  0x27   :  { %765 = vmatprep.mubr.bf16.mxu1 %v93_v23 }
  0x28   :  { %1263 = vmatpush3.bf16.msra.mxu0 %v1415_v54 }
  0x29   :  { %1285 = vmatpush3.bf16.msra.mxu1 %v1416_v55  ;;  %1264 = vmatprep.subr.bf16.mxu0 %v1417_v56 }
  0x2a   :  { %1286 = vmatprep.subr.bf16.mxu1 %v1418_v57 }
  0x2c   :  { %1265 = vmatpush3.bf16.msra.mxu0 %v1419_v58 }
  0x2d   :  { %1287 = vmatpush3.bf16.msra.mxu1 %v1420_v59  ;;  %1266 = vmatprep.subr.bf16.mxu0 %v1421_v60 }
  0x2e   :  { %1288 = vmatprep.subr.bf16.mxu1 %v1422_v61 }
  0x30   :  { %1267 = vmatpush3.bf16.msra.mxu0 %v1423_v62 }
  0x31   :  { %1289 = vmatpush3.bf16.msra.mxu1 %v1424_v63  ;;  %1268 = vmatprep.subr.bf16.mxu0 %v1425_v0 }
  0x32   :  { %1290 = vmatprep.subr.bf16.mxu1 %v1426_v1 }
  0x34   :  { %1269 = vmatpush3.bf16.msra.mxu0 %v1427_v2 }
  0x35   :  { %1291 = vmatpush3.bf16.msra.mxu1 %v1428_v3  ;;  %1270 = vmatprep.subr.bf16.mxu0 %v1429_v4 }
  0x36   :  { %1292 = vmatprep.subr.bf16.mxu1 %v1430_v5 }
  0x38   :  { %1271 = vmatpush3.bf16.msra.mxu0 %v1431_v6 }
  0x39   :  { %1293 = vmatpush3.bf16.msra.mxu1 %v1432_v7  ;;  %1272 = vmatprep.subr.bf16.mxu0 %v1433_v8 }
  0x3a   :  { %1294 = vmatprep.subr.bf16.mxu1 %v1434_v9 }
  0x3c   :  { %1273 = vmatpush3.bf16.msra.mxu0 %v1435_v11 }
  0x3d   :  { %1295 = vmatpush3.bf16.msra.mxu1 %v1436_v12  ;;  %1274 = vmatprep.subr.bf16.mxu0 %v1437_v15 }
  0x3e   :  { %1296 = vmatprep.subr.bf16.mxu1 %v1438_v16 }
  0x40   :  { %1275 = vmatpush3.bf16.msra.mxu0 %v1439_v19 }
  0x41   :  { %1297 = vmatpush3.bf16.msra.mxu1 %v1440_v20 }
  0x42   :  { %16 = vsyncpa [#allocation3], 0  ;;  %v1442_v26 = vld [vmem:[%s1856_s3] sm:$0xff]   ;;  %v1483_v27 = vmov 0.0   ;;  %v1443_v28 = vld [vmem:[%s1856_s3 + $0x8] sm:$0xff]   ;;  %vm1484_vm0 = vmmov 0  }
  0x43   :  { %726 = vmatmul.mubr.bf16.vlgmr.msra.gmra.mrb[4].mxu0 %v90_v24  ;;  %1324 = vmatprep.subr.bf16.mxu0 %v1483_v27  ;;  %v1444_v29 = vld [vmem:[%s1856_s3 + $0x10] sm:$0xff]   ;;  %v1445_v30 = vld [vmem:[%s1856_s3 + $0x18] sm:$0xff]   ;;  %v1446_v31 = vld [vmem:[%s1858_s5] sm:$0xff]   ;;  %vm814_vm1 = vcmask 523264  }
  0x44   :  { %766 = vmatmul.mubr.bf16.vlgmr.msra.gmra.mrb[4].mxu1 %v92_v25  ;;  %1336 = vmatprep.subr.bf16.mxu1 %v1483_v27  ;;  %v1447_v32 = vld [vmem:[%s1858_s5 + $0x8] sm:$0xff]   ;;  %v1127_v35 = vld [vmem:[%s1855_s2] ss:$0 sm:$0xff]  ;;  %v1448_v60 = vld [vmem:[%s1858_s5 + $0x10] sm:$0xff]  }
  0x45   :  { %1325 = vmatpush3.bf16.msra.mxu0 %v1442_v26  ;;  %1332 = vmatprep.mubr.msk.bf16.mxu0 %vm1484_vm0, %v1483_v27  ;;  %v1449_v61 = vld [vmem:[%s1858_s5 + $0x18] sm:$0xff]   ;;  %v1450_v62 = vld [vmem:[%s1860_s7] sm:$0xff]   ;;  %v1451_v63 = vld [vmem:[%s1860_s7 + $0x8] sm:$0xff]  }
  0x46   :  { %1326 = vmatprep.subr.bf16.mxu0 %v1483_v27  ;;  %1344 = vmatprep.mubr.msk.bf16.mxu1 %vm1484_vm0, %v1483_v27  ;;  %v1192_v0 = vld [vmem:[%s1857_s4] ss:$0 sm:$0xff]  ;;  %v1452_v8 = vld [vmem:[%s1860_s7 + $0x10] sm:$0xff]   ;;  %v1453_v9 = vld [vmem:[%s1860_s7 + $0x18] sm:$0xff]  }
  0x47   :  { %1337 = vmatpush3.bf16.msra.mxu1 %v1446_v31  ;;  %v1454_v10 = vld [vmem:[%s1862_s9] sm:$0xff]   ;;  %v1455_v11 = vld [vmem:[%s1862_s9 + $0x8] sm:$0xff]   ;;  %v1456_v20 = vld [vmem:[%s1862_s9 + $0x10] sm:$0xff]  }
  0x48   :  { %1338 = vmatprep.subr.bf16.mxu1 %v1483_v27  ;;  %v1198_v12 = vld [vmem:[%s1859_s6] ss:$0 sm:$0xff]  ;;  %v1457_v21 = vld [vmem:[%s1862_s9 + $0x18] sm:$0xff]   ;;  %s1485_s9 = smov [#allocation2]  }
  0x49   :  { %1327 = vmatpush3.bf16.msra.mxu0 %v1443_v28  ;;  %v1204_v22 = vld [vmem:[%s1861_s8] ss:$0 sm:$0xff]  ;;  %s1119_s27 = sshll.u32 %s1485_s9, 4  ;;  %s1120_s27 = int_to_ptr.vmem [resolvable:$true] %s1119_s27 }
  0x4a   :  { %1328 = vmatprep.subr.bf16.mxu0 %v1483_v27  ;;  %s1458_s8 = scalar_lea.vmem %s1120_s27, 16  ;;  %s1462_s28 = scalar_lea.vmem %s1120_s27, 32 }
  0x4b   :  { %1339 = vmatpush3.bf16.msra.mxu1 %v1447_v32  ;;  %p1459_p0 = scmp.ne.s32.totalorder %s1120_s27, %s1458_s8  ;;  %p1463_p1 = scmp.lt.s32.totalorder %s1120_s27, %s1120_s27 }
  0x4c   :  { %1340 = vmatprep.subr.bf16.mxu1 %v1483_v27  ;;  %p1464_p2 = scmp.lt.s32.totalorder %s1462_s28, %s1458_s8 }
  0x4d   :  { %1329 = vmatpush3.bf16.msra.mxu0 %v1444_v29 }
  0x4e   :  { %1330 = vmatprep.subr.bf16.mxu0 %v1483_v27  ;;  %p1465_p3 = por %p1464_p2, %p1463_p1 }
  0x4f   :  { %1341 = vmatpush3.bf16.msra.mxu1 %v1448_v60 }
  0x50   :  { %1342 = vmatprep.subr.bf16.mxu1 %v1483_v27  ;;  %p1466_p4 = pnand %p1465_p3, %p1459_p0 }
  0x51   :  { %1331 = vmatpush3.bf16.msra.mxu0 %v1445_v30 }
  0x52   :  { %1348 = vmatprep.subr.bf16.mxu0 %v1483_v27 }
  0x53   :  { %1343 = vmatpush3.bf16.msra.mxu1 %v1449_v61 }
  0x54   :  { %1360 = vmatprep.subr.bf16.mxu1 %v1483_v27 }
  0xf6   :  { %v1232_v33 = vpop.f32.mrb[0].mxu0 }
  0xf7   :  { %v1254_v34 = vpop.f32.mrb[0].mxu1  ;;  %v1233_v36 = vpop.f32.mrb[1].mxu0 }
  0xf8   :  { %v1255_v37 = vpop.f32.mrb[1].mxu1  ;;  %v1234_v38 = vadd.f32 %v1233_v36, %v1232_v33  ;;  %v1235_v40 = vpop.f32.mrb[2].mxu0 }
  0xf9   :  { %v1256_v39 = vadd.f32 %v1255_v37, %v1254_v34  ;;  %v1257_v41 = vpop.f32.mrb[2].mxu1  ;;  %v1236_v42 = vpop.f32.mrb[3].mxu0 }
  0xfa   :  { %v1258_v43 = vpop.f32.mrb[3].mxu1  ;;  %v648_v44 = vadd.f32 %v1234_v38, %v1127_v35 }
  0xfc   :  { %v688_v45 = vadd.f32 %v1256_v39, %v648_v44 }
 0x116   :  { %v1276_v46 = vpop.f32.mrb[4].mxu0 }
 0x117   :  { %v1298_v47 = vpop.f32.mrb[4].mxu1  ;;  %v1277_v48 = vpop.f32.mrb[5].mxu0 }
 0x118   :  { %v1299_v49 = vpop.f32.mrb[5].mxu1  ;;  %v1278_v50 = vadd.f32 %v1277_v48, %v1276_v46  ;;  %v1279_v52 = vpop.f32.mrb[6].mxu0 }
 0x119   :  { %v1300_v51 = vadd.f32 %v1299_v49, %v1298_v47  ;;  %v1301_v53 = vpop.f32.mrb[6].mxu1  ;;  %v1280_v54 = vpop.f32.mrb[7].mxu0 }
 0x11a   :  { %v1302_v55 = vpop.f32.mrb[7].mxu1  ;;  %v728_v56 = vadd.f32 %v1278_v50, %v688_v45 }
 0x11c   :  { %v768_v57 = vadd.f32 %v1300_v51, %v728_v56 }
 0x11e   :  { %v773_v58 = vmax.f32 %v768_v57, 0.0 }
 0x120   :  { %v774_v59 = vpack.c.bf16 %v773_v58, %v773_v58 }
 0x122   :  { %1333 = vmatmul.mubr.msk.bf16.vlgmr.msra.gmra.mrb[8].mxu0 %vm814_vm1, %v774_v59 }
 0x123   :  { %1356 = vmatprep.mubr.msk.bf16.mxu0 %vm1484_vm0, %v1483_v27  ;;  %1349 = vmatpush3.bf16.msra.mxu0 %v1450_v62 }
 0x124   :  { %1350 = vmatprep.subr.bf16.mxu0 %v1483_v27 }
 0x127   :  { %1351 = vmatpush3.bf16.msra.mxu0 %v1451_v63 }
 0x128   :  { %1352 = vmatprep.subr.bf16.mxu0 %v1483_v27 }
 0x12b   :  { %1353 = vmatpush3.bf16.msra.mxu0 %v1452_v8 }
 0x12c   :  { %1354 = vmatprep.subr.bf16.mxu0 %v1483_v27 }
 0x12f   :  { %1355 = vmatpush3.bf16.msra.mxu0 %v1453_v9 }
 0x1f5   :  { %v852_v1 = vpop.f32.mrb[8].mxu0 }
 0x1f6   :  { %v853_v2 = vadd.f32 %v1192_v0, %v852_v1  ;;  %v1334_v3 = vpop.f32.mrb[9].mxu0 }
 0x1f7   :  { %v855_v4 = vpop.f32.mrb[10].mxu0 }
 0x1f8   :  { %v858_v5 = vmax.f32 %v853_v2, 0.0  ;;  %v1335_v6 = vpop.f32.mrb[11].mxu0 }
 0x1fa   :  { %v859_v7 = vpack.c.bf16 %v858_v5, %v858_v5 }
 0x1fc   :  { %1345 = vmatmul.mubr.msk.bf16.vlgmr.msra.gmra.mrb[8].mxu1 %vm814_vm1, %v859_v7 }
 0x1fd   :  { %1368 = vmatprep.mubr.msk.bf16.mxu1 %vm1484_vm0, %v1483_v27  ;;  %1361 = vmatpush3.bf16.msra.mxu1 %v1454_v10 }
 0x1fe   :  { %1362 = vmatprep.subr.bf16.mxu1 %v1483_v27 }
 0x201   :  { %1363 = vmatpush3.bf16.msra.mxu1 %v1455_v11 }
 0x202   :  { %1364 = vmatprep.subr.bf16.mxu1 %v1483_v27 }
 0x205   :  { %1365 = vmatpush3.bf16.msra.mxu1 %v1456_v20 }
 0x206   :  { %1366 = vmatprep.subr.bf16.mxu1 %v1483_v27  ;;  %v1210_v27 = vld [vmem:[%s1863_s10] ss:$0 sm:$0xff] }
 0x209   :  { %1367 = vmatpush3.bf16.msra.mxu1 %v1457_v21 }
 0x2cf   :  { %v936_v13 = vpop.f32.mrb[8].mxu1 }
 0x2d0   :  { %v937_v14 = vadd.f32 %v1198_v12, %v936_v13  ;;  %v1346_v15 = vpop.f32.mrb[9].mxu1 }
 0x2d1   :  { %v939_v16 = vpop.f32.mrb[10].mxu1 }
 0x2d2   :  { %v942_v17 = vmax.f32 %v937_v14, 0.0  ;;  %v1347_v18 = vpop.f32.mrb[11].mxu1 }
 0x2d4   :  { %v943_v19 = vpack.c.bf16 %v942_v17, %v942_v17 }
 0x2d6   :  { %1357 = vmatmul.mubr.msk.bf16.vlgmr.msra.gmra.mrb[12].mxu0 %vm814_vm1, %v943_v19 }
 0x3a9   :  { %v1020_v23 = vpop.f32.mrb[12].mxu0 }
 0x3aa   :  { %v1021_v24 = vadd.f32 %v1204_v22, %v1020_v23  ;;  %v1358_v25 = vpop.f32.mrb[13].mxu0 }
 0x3ab   :  { %v1023_v26 = vpop.f32.mrb[14].mxu0 }
 0x3ac   :  { %v1026_v28 = vmax.f32 %v1021_v24, 0.0  ;;  %v1359_v29 = vpop.f32.mrb[15].mxu0 }
 0x3ae   :  { %v1027_v30 = vpack.c.bf16 %v1026_v28, %v1026_v28 }
 0x3b0   :  { %1369 = vmatmul.mubr.msk.bf16.vlgmr.msra.gmra.mrb[12].mxu1 %vm814_vm1, %v1027_v30 }
 0x483   :  { %v1104_v31 = vpop.f32.mrb[12].mxu1 }
 0x484   :  { %v1105_v32 = vadd.f32 %v1210_v27, %v1104_v31  ;;  %v1370_v33 = vpop.f32.mrb[13].mxu1 }
 0x485   :  { %v1107_v34 = vpop.f32.mrb[14].mxu1 }
 0x486   :  { %v1110_v35 = vmax.f32 %v1105_v32, 0.0  ;;  %v1371_v36 = vpop.f32.mrb[15].mxu1 }
 0x488   :  { %v1111_v37 = vpack.c.bf16 %v1110_v35, %v1110_v35 }
 0x48a   :  { %1112 = vst [vmem:[#allocation2] sm:$0x1] %v1111_v37 }
 0x48b   :  { %1469 = shalt.err (!%p1466_p4)
}
 0x48c   :  { %s1470_s30 = scalar_lea.hbm %s1864_s11, 16 }
 0x48d   :  { %p1471_p5 = scmp.ne.s32.totalorder %s1864_s11, %s1470_s30  ;;  %p1474_p6 = scmp.lt.u32.totalorder %s1470_s30, %s1864_s11 }
 0x48f   :  { %p1476_p7 = pnand %p1474_p6, %p1471_p5 }
 0x491   :  { %1479 = shalt.err (!%p1476_p7)
}
 0x492   :  { %1122 = dma.vmem_to_hbm [thread:$0]  %s1120_s27, 16, %s1864_s11, [#allocation3]  }
 0x493   :  { %1480 = dma.done.wait [#allocation3], 16  }
 0x494   :  { %1481 = vsyncadd [#allocation3], 4294967280 }
 0x495   :  { %1126 = vsyncpa [#allocation3], 1 }

</bundles_post_ra>
